<compile_context>
chip_gen: v6e
topology: v6e:2x2x1
jax: 0.10.0
libtpu: 0.0.40
codegen_flags: <defaults>
</compile_context>

<pallas_src>
import functools

import jax
import jax.numpy as jnp
from jax.experimental import pallas as pl
from jax.experimental.pallas import tpu as pltpu


def _round_up(x, m):
    return (x + m - 1) // m * m


def _act(x, act_fn):
    if act_fn == "relu":
        return jnp.maximum(x, 0.0)
    elif act_fn == "gelu":
        # exact (erf-based) GELU, matching torch.nn.GELU default
        return 0.5 * x * (1.0 + jax.lax.erf(x * 0.7071067811865476))
    elif act_fn == "tanh":
        return jnp.tanh(x)
    raise ValueError(f"unknown act_fn: {act_fn}")


def xapi_aggregate_kernel(va_ref, vb_ref, w1a_ref, w1b_ref, b1_ref,
                          w2_ref, b2_ref, out_ref, acc_a, acc_b,
                          *, act_fn, seq_len, ts, mask_seq):
    k = pl.program_id(1)

    @pl.when(k == 0)
    def _():
        acc_a[...] = jnp.zeros_like(acc_a)
        acc_b[...] = jnp.zeros_like(acc_b)

    # Stream tiles in their original dtype; cast to f32 in-register before the
    # cross-sublane reduce (v5e has no bf16 VPU) and accumulate in f32 scratch.
    va = va_ref[...].astype(jnp.float32)
    vb = vb_ref[...].astype(jnp.float32)
    if mask_seq:
        # Ragged last seq tile: rows with global seq index >= seq_len hold
        # unspecified boundary-block data and must not reach the sum.
        idx = jax.lax.broadcasted_iota(jnp.int32, va.shape, 1) + k * ts
        valid = idx < seq_len
        va = jnp.where(valid, va, 0.0)
        vb = jnp.where(valid, vb, 0.0)
    acc_a[...] += jnp.sum(va, axis=1)
    acc_b[...] += jnp.sum(vb, axis=1)

    @pl.when(k == pl.num_programs(1) - 1)
    def _():
        a = acc_a[...]
        b = acc_b[...]
        # concat([a, b], -1) @ W1  ==  a @ W1[:F] + b @ W1[F:]
        h1 = (jnp.dot(a, w1a_ref[...], preferred_element_type=jnp.float32)
              + jnp.dot(b, w1b_ref[...], preferred_element_type=jnp.float32)
              + b1_ref[...])
        h1 = _act(h1, act_fn)
        h2 = jnp.dot(h1, w2_ref[...], preferred_element_type=jnp.float32) + b2_ref[...]
        out_ref[...] = _act(h2, act_fn).astype(out_ref.dtype)


def xapi_aggregate(V_A, V_B, W1, b1, W2, b2, act_fn="relu"):
    """W1: (2*F, H) pre-transposed; b1: (H,); W2: (H, H); b2: (H,)."""
    B, S, F = V_A.shape
    assert V_B.shape == (B, S, F)
    H = W1.shape[1]
    assert W1.shape[0] == 2 * F and W2.shape == (H, H)

    in_itemsize = jnp.dtype(V_A.dtype).itemsize
    H_pad = _round_up(H, 128)
    # Lane-padded width the (..., F) blocks occupy in VMEM (HBM traffic is still
    # only F real lanes; F_vmem is used for VMEM budgeting only).
    F_vmem = _round_up(F, 128)

    # Generation-aware VMEM budget (v7x: 64 MiB/TC; v5e/v6e: 128 MiB).
    try:
        vmem_cap = int(pltpu.get_tpu_info().vmem_capacity_bytes)
    except Exception:
        vmem_cap = 128 * 1024 * 1024
    if vmem_cap <= 64 * 1024 * 1024:
        input_budget = 24 * 1024 * 1024
        vmem_ceiling = 40 * 1024 * 1024
    else:
        input_budget = 48 * 1024 * 1024
        vmem_ceiling = 96 * 1024 * 1024

    # --- tile sizes ----------------------------------------------------------
    # seq tile: multiple of 8, capped; shrink if even the smallest batch tile
    # would blow the streamed double-buffered VMEM footprint.
    ts = min(_round_up(S, 8), 512)
    while ts > 8 and 4 * 8 * ts * F_vmem * in_itemsize > input_budget:
        ts = max(8, _round_up(ts // 2, 8))
    # TODO(synk): F is streamed untiled; an F-tiled variant would be needed if
    # even a (8, 8, F) double-buffered block cannot fit the VMEM budget.

    # batch tile: grow tb first (bigger matmul M, fewer epilogues); keep >= 2
    # parallel batch tiles when the batch allows it so both v7x TensorCores work.
    tb_cap = min(_round_up(B, 8), 256)
    if _round_up(B, 8) >= 16:
        tb_cap = min(tb_cap, _round_up(pl.cdiv(B, 2), 8))
    max_tb = input_budget // (4 * ts * F_vmem * in_itemsize)
    tb = max(8, min(tb_cap, (max_tb // 8) * 8))
    if tb >= B:
        tb = B                          # single batch tile, exactly covering B
    grid_b = pl.cdiv(B, tb)
    grid_s = pl.cdiv(S, ts)
    B_out = grid_b * tb
    mask_seq = (S % ts) != 0

    # Only the small parameter tensors are padded (H -> H_pad lanes). The big
    # streamed V_A/V_B tensors are NOT padded, copied or upcast in HBM.
    def pad_to(x, shape):
        pads = [(0, s - d) for d, s in zip(x.shape, shape)]
        return jnp.pad(x, pads) if any(p for _, p in pads) else x

    W1a = pad_to(W1[:F].astype(jnp.float32), (F, H_pad))
    W1b = pad_to(W1[F:].astype(jnp.float32), (F, H_pad))
    W2p = pad_to(W2.astype(jnp.float32), (H_pad, H_pad))
    b1p = pad_to(b1.astype(jnp.float32).reshape(1, H), (1, H_pad))
    b2p = pad_to(b2.astype(jnp.float32).reshape(1, H), (1, H_pad))

    # VMEM estimate: streamed inputs + output double-buffered, resident weights
    # counted with their (default) double-buffering, f32 accumulators single.
    tb8 = _round_up(tb, 8)
    w_bytes = (2 * _round_up(F, 8) * H_pad + H_pad * H_pad + 2 * 8 * H_pad) * 4
    vmem_est = (4 * tb * ts * F_vmem * in_itemsize
                + 2 * w_bytes
                + 2 * tb8 * H_pad * 4
                + 2 * tb8 * F_vmem * 4)
    vmem_limit = int(min(vmem_ceiling,
                         max(vmem_est * 1.4 + (2 << 20), 16 * 1024 * 1024)))

    n_trans = 0 if act_fn == "relu" else 2 * B * H
    cost = pl.CostEstimate(
        flops=2 * B * S * F + 2 * B * (2 * F) * H + 2 * B * H * H,
        transcendentals=n_trans,
        bytes_accessed=(2 * B * S * F * in_itemsize                  # streamed inputs
                        + (2 * F * H_pad + H_pad * H_pad + 2 * H_pad) * 4
                        + B_out * H_pad * 4),
    )

    kernel = functools.partial(xapi_aggregate_kernel, act_fn=act_fn,
                               seq_len=S, ts=ts, mask_seq=mask_seq)

    out_p = pl.pallas_call(
        kernel,
        grid=(grid_b, grid_s),
        out_shape=jax.ShapeDtypeStruct((B_out, H_pad), jnp.float32),
        in_specs=[
            pl.BlockSpec((tb, ts, F), lambda i, k: (i, k, 0)),   # V_A tile (native dtype, no F pad)
            pl.BlockSpec((tb, ts, F), lambda i, k: (i, k, 0)),   # V_B tile
            pl.BlockSpec((F, H_pad), lambda i, k: (0, 0)),       # W1[:F]  (resident)
            pl.BlockSpec((F, H_pad), lambda i, k: (0, 0)),       # W1[F:]  (resident)
            pl.BlockSpec((1, H_pad), lambda i, k: (0, 0)),       # b1      (resident)
            pl.BlockSpec((H_pad, H_pad), lambda i, k: (0, 0)),   # W2      (resident)
            pl.BlockSpec((1, H_pad), lambda i, k: (0, 0)),       # b2      (resident)
        ],
        out_specs=pl.BlockSpec((tb, H_pad), lambda i, k: (i, 0)),
        scratch_shapes=[
            pltpu.VMEM((tb, F), jnp.float32),   # acc_a
            pltpu.VMEM((tb, F), jnp.float32),   # acc_b
        ],
        compiler_params=pltpu.CompilerParams(
            dimension_semantics=("parallel", "arbitrary"),
            vmem_limit_bytes=vmem_limit,
        ),
        cost_estimate=cost,
    )(V_A, V_B, W1a, W1b, b1p, W2p, b2p)

    return out_p[:B, :H]


if __name__ == "__main__":
    def reference(V_A, V_B, W1, b1, W2, b2, act_fn):
        def act(x):
            if act_fn == "relu":
                return jnp.maximum(x, 0.0)
            if act_fn == "gelu":
                return 0.5 * x * (1.0 + jax.lax.erf(x * 0.7071067811865476))
            return jnp.tanh(x)
        x = jnp.concatenate([V_A.sum(axis=1), V_B.sum(axis=1)], axis=1)
        h1 = act(x @ W1 + b1)
        return act(h1 @ W2 + b2)

    def make_case(key, B, S, F, H):
        k1, k2, k3, k4, k5, k6 = jax.random.split(key, 6)
        V_A = jax.random.normal(k1, (B, S, F), jnp.float32)
        V_B = jax.random.normal(k2, (B, S, F), jnp.float32)
        input_size = 2 * F
        bound1 = 1.0 / float(input_size) ** 0.5
        W1 = jax.random.uniform(k3, (input_size, H), jnp.float32, -bound1, bound1)
        b1 = jax.random.uniform(k4, (H,), jnp.float32, -bound1, bound1)
        bound2 = 1.0 / float(H) ** 0.5
        W2 = jax.random.uniform(k5, (H, H), jnp.float32, -bound2, bound2)
        b2 = jax.random.uniform(k6, (H,), jnp.float32, -bound2, bound2)
        return V_A, V_B, W1, b1, W2, b2

    key = jax.random.PRNGKey(0)
    k_a, k_b = jax.random.split(key)

    # Case 1: module-sized example (batch=2, seq=8, feat=16, hidden=32), relu.
    args1 = make_case(k_a, 2, 8, 16, 32)
    out1 = jax.block_until_ready(xapi_aggregate(*args1, act_fn="relu"))
    ref1 = reference(*args1, act_fn="relu")
    assert out1.shape == (2, 32)
    assert jnp.allclose(out1, ref1, atol=1e-4, rtol=1e-4), "mismatch vs reference (case 1)"

    # Case 2: ragged seq (multi-step reduction + in-kernel seq mask), tanh.
    args2 = make_case(k_b, 4, 520, 16, 32)
    out2 = jax.block_until_ready(xapi_aggregate(*args2, act_fn="tanh"))
    ref2 = reference(*args2, act_fn="tanh")
    assert out2.shape == (4, 32)
    assert jnp.allclose(out2, ref2, atol=1e-3, rtol=1e-3), "mismatch vs reference (case 2)"

    print("KERNEL_OK")
</pallas_src>

<mosaic_0001>
module attributes {stable_mosaic.version = 11 : i64} {
  func.func @xapi_aggregate_kernel(%arg0: i32, %arg1: i32, %arg2: memref<2x8x16xf32, #tpu.memory_space<vmem>>, %arg3: memref<2x8x16xf32, #tpu.memory_space<vmem>>, %arg4: memref<16x128xf32, #tpu.memory_space<vmem>>, %arg5: memref<16x128xf32, #tpu.memory_space<vmem>>, %arg6: memref<1x128xf32, #tpu.memory_space<vmem>>, %arg7: memref<128x128xf32, #tpu.memory_space<vmem>>, %arg8: memref<1x128xf32, #tpu.memory_space<vmem>>, %arg9: memref<2x128xf32, #tpu.memory_space<vmem>>, %arg10: memref<2x16xf32, #tpu.memory_space<vmem>>, %arg11: memref<2x16xf32, #tpu.memory_space<vmem>>) attributes {dimension_semantics = [#tpu.dimension_semantics<parallel>, #tpu.dimension_semantics<arbitrary>], iteration_bounds = array<i64: 1, 1>, scalar_prefetch = 0 : i64, scratch_operands = 2 : i64, tpu.core_type = #tpu.core_type<tc>, window_params = [{transform_indices = @transform_0, window_bounds = array<i64: 2, 8, 16>}, {transform_indices = @transform_1, window_bounds = array<i64: 2, 8, 16>}, {pipeline_mode = #tpu.pipeline_mode<synchronous>, transform_indices = @transform_2, window_bounds = array<i64: 16, 128>}, {pipeline_mode = #tpu.pipeline_mode<synchronous>, transform_indices = @transform_3, window_bounds = array<i64: 16, 128>}, {pipeline_mode = #tpu.pipeline_mode<synchronous>, transform_indices = @transform_4, window_bounds = array<i64: 1, 128>}, {pipeline_mode = #tpu.pipeline_mode<synchronous>, transform_indices = @transform_5, window_bounds = array<i64: 128, 128>}, {pipeline_mode = #tpu.pipeline_mode<synchronous>, transform_indices = @transform_6, window_bounds = array<i64: 1, 128>}, {transform_indices = @transform_7, window_bounds = array<i64: 2, 128>}]} {
    %c0_i32 = arith.constant 0 : i32
    %0 = arith.cmpi eq, %arg1, %c0_i32 : i32
    %1 = arith.extui %0 : i1 to i32
    %c0_i32_0 = arith.constant 0 : i32
    %2 = arith.cmpi ne, %1, %c0_i32_0 : i32
    scf.if %2 {
      %cst_17 = arith.constant 0.000000e+00 : f32
      %16 = vector.broadcast %cst_17 : f32 to vector<2x16xf32>
      %c0_18 = arith.constant 0 : index
      %c0_19 = arith.constant 0 : index
      %17 = vector.load %arg10[%c0_18, %c0_19] : memref<2x16xf32, #tpu.memory_space<vmem>>, vector<2x16xf32>
      tpu.vector_store %arg10[%c0_18, %c0_19], %16 {strides = array<i32>} : memref<2x16xf32, #tpu.memory_space<vmem>>, vector<2x16xf32>,
      %cst_20 = arith.constant 0.000000e+00 : f32
      %18 = vector.broadcast %cst_20 : f32 to vector<2x16xf32>
      %c0_21 = arith.constant 0 : index
      %c0_22 = arith.constant 0 : index
      %19 = vector.load %arg11[%c0_21, %c0_22] : memref<2x16xf32, #tpu.memory_space<vmem>>, vector<2x16xf32>
      tpu.vector_store %arg11[%c0_21, %c0_22], %18 {strides = array<i32>} : memref<2x16xf32, #tpu.memory_space<vmem>>, vector<2x16xf32>,
    } else {
    }
    %c0 = arith.constant 0 : index
    %c0_1 = arith.constant 0 : index
    %c0_2 = arith.constant 0 : index
    %3 = vector.load %arg2[%c0, %c0_1, %c0_2] : memref<2x8x16xf32, #tpu.memory_space<vmem>>, vector<2x8x16xf32>
    %c0_3 = arith.constant 0 : index
    %c0_4 = arith.constant 0 : index
    %c0_5 = arith.constant 0 : index
    %4 = vector.load %arg3[%c0_3, %c0_4, %c0_5] : memref<2x8x16xf32, #tpu.memory_space<vmem>>, vector<2x8x16xf32>
    %c0_6 = arith.constant 0 : index
    %c0_7 = arith.constant 0 : index
    %5 = vector.load %arg10[%c0_6, %c0_7] : memref<2x16xf32, #tpu.memory_space<vmem>>, vector<2x16xf32>
    %cst = arith.constant dense<0.000000e+00> : vector<2x16xf32>
    %6 = vector.multi_reduction <add>, %3, %cst [1] : vector<2x8x16xf32> to vector<2x16xf32>
    %7 = arith.addf %5, %6 : vector<2x16xf32>
    %c0_8 = arith.constant 0 : index
    %c0_9 = arith.constant 0 : index
    %8 = vector.load %arg10[%c0_8, %c0_9] : memref<2x16xf32, #tpu.memory_space<vmem>>, vector<2x16xf32>
    tpu.vector_store %arg10[%c0_8, %c0_9], %7 {strides = array<i32>} : memref<2x16xf32, #tpu.memory_space<vmem>>, vector<2x16xf32>,
    %c0_10 = arith.constant 0 : index
    %c0_11 = arith.constant 0 : index
    %9 = vector.load %arg11[%c0_10, %c0_11] : memref<2x16xf32, #tpu.memory_space<vmem>>, vector<2x16xf32>
    %cst_12 = arith.constant dense<0.000000e+00> : vector<2x16xf32>
    %10 = vector.multi_reduction <add>, %4, %cst_12 [1] : vector<2x8x16xf32> to vector<2x16xf32>
    %11 = arith.addf %9, %10 : vector<2x16xf32>
    %c0_13 = arith.constant 0 : index
    %c0_14 = arith.constant 0 : index
    %12 = vector.load %arg11[%c0_13, %c0_14] : memref<2x16xf32, #tpu.memory_space<vmem>>, vector<2x16xf32>
    tpu.vector_store %arg11[%c0_13, %c0_14], %11 {strides = array<i32>} : memref<2x16xf32, #tpu.memory_space<vmem>>, vector<2x16xf32>,
    %c0_i32_15 = arith.constant 0 : i32
    %13 = arith.cmpi eq, %arg1, %c0_i32_15 : i32
    %14 = arith.extui %13 : i1 to i32
    %c0_i32_16 = arith.constant 0 : i32
    %15 = arith.cmpi ne, %14, %c0_i32_16 : i32
    scf.if %15 {
      %c0_17 = arith.constant 0 : index
      %c0_18 = arith.constant 0 : index
      %16 = vector.load %arg10[%c0_17, %c0_18] : memref<2x16xf32, #tpu.memory_space<vmem>>, vector<2x16xf32>
      %c0_19 = arith.constant 0 : index
      %c0_20 = arith.constant 0 : index
      %17 = vector.load %arg11[%c0_19, %c0_20] : memref<2x16xf32, #tpu.memory_space<vmem>>, vector<2x16xf32>
      %c0_21 = arith.constant 0 : index
      %c0_22 = arith.constant 0 : index
      %18 = vector.load %arg4[%c0_21, %c0_22] : memref<16x128xf32, #tpu.memory_space<vmem>>, vector<16x128xf32>
      %cst_23 = arith.constant dense<0.000000e+00> : vector<2x128xf32>
      %19 = tpu.matmul %16, %18, %cst_23 {dimension_numbers = #tpu.dot_dimension_numbers<[1], [0], [0], [1], [0, 0, 1, 1], [], []>} : vector<2x16xf32>, vector<16x128xf32>, vector<2x128xf32> -> vector<2x128xf32>
      %c0_24 = arith.constant 0 : index
      %c0_25 = arith.constant 0 : index
      %20 = vector.load %arg5[%c0_24, %c0_25] : memref<16x128xf32, #tpu.memory_space<vmem>>, vector<16x128xf32>
      %cst_26 = arith.constant dense<0.000000e+00> : vector<2x128xf32>
      %21 = tpu.matmul %17, %20, %cst_26 {dimension_numbers = #tpu.dot_dimension_numbers<[1], [0], [0], [1], [0, 0, 1, 1], [], []>} : vector<2x16xf32>, vector<16x128xf32>, vector<2x128xf32> -> vector<2x128xf32>
      %22 = arith.addf %19, %21 : vector<2x128xf32>
      %c0_27 = arith.constant 0 : index
      %c0_28 = arith.constant 0 : index
      %23 = vector.load %arg6[%c0_27, %c0_28] : memref<1x128xf32, #tpu.memory_space<vmem>>, vector<1x128xf32>
      %24 = vector.broadcast %23 : vector<1x128xf32> to vector<2x128xf32>
      %25 = arith.addf %22, %24 : vector<2x128xf32>
      %cst_29 = arith.constant 0.000000e+00 : f32
      %26 = vector.broadcast %cst_29 : f32 to vector<2x128xf32>
      %27 = arith.maximumf %25, %26 : vector<2x128xf32>
      %c0_30 = arith.constant 0 : index
      %c0_31 = arith.constant 0 : index
      %28 = vector.load %arg7[%c0_30, %c0_31] : memref<128x128xf32, #tpu.memory_space<vmem>>, vector<128x128xf32>
      %cst_32 = arith.constant dense<0.000000e+00> : vector<2x128xf32>
      %29 = tpu.matmul %27, %28, %cst_32 {dimension_numbers = #tpu.dot_dimension_numbers<[1], [0], [0], [1], [0, 0, 1, 1], [], []>} : vector<2x128xf32>, vector<128x128xf32>, vector<2x128xf32> -> vector<2x128xf32>
      %c0_33 = arith.constant 0 : index
      %c0_34 = arith.constant 0 : index
      %30 = vector.load %arg8[%c0_33, %c0_34] : memref<1x128xf32, #tpu.memory_space<vmem>>, vector<1x128xf32>
      %31 = vector.broadcast %30 : vector<1x128xf32> to vector<2x128xf32>
      %32 = arith.addf %29, %31 : vector<2x128xf32>
      %cst_35 = arith.constant 0.000000e+00 : f32
      %33 = vector.broadcast %cst_35 : f32 to vector<2x128xf32>
      %34 = arith.maximumf %32, %33 : vector<2x128xf32>
      %c0_36 = arith.constant 0 : index
      %c0_37 = arith.constant 0 : index
      %35 = vector.load %arg9[%c0_36, %c0_37] : memref<2x128xf32, #tpu.memory_space<vmem>>, vector<2x128xf32>
      tpu.vector_store %arg9[%c0_36, %c0_37], %34 {strides = array<i32>} : memref<2x128xf32, #tpu.memory_space<vmem>>, vector<2x128xf32>,
    } else {
    }
    return
  }
  func.func @transform_0(%arg0: i32, %arg1: i32) -> (i32, i32, i32) {
    %c0_i32 = arith.constant 0 : i32
    %c0_i32_0 = arith.constant 0 : i32
    return %arg0, %arg1, %c0_i32 : i32, i32, i32
  }
  func.func @transform_1(%arg0: i32, %arg1: i32) -> (i32, i32, i32) {
    %c0_i32 = arith.constant 0 : i32
    %c0_i32_0 = arith.constant 0 : i32
    return %arg0, %arg1, %c0_i32 : i32, i32, i32
  }
  func.func @transform_2(%arg0: i32, %arg1: i32) -> (i32, i32) {
    %c0_i32 = arith.constant 0 : i32
    %c0_i32_0 = arith.constant 0 : i32
    %c0_i32_1 = arith.constant 0 : i32
    return %c0_i32, %c0_i32_0 : i32, i32
  }
  func.func @transform_3(%arg0: i32, %arg1: i32) -> (i32, i32) {
    %c0_i32 = arith.constant 0 : i32
    %c0_i32_0 = arith.constant 0 : i32
    %c0_i32_1 = arith.constant 0 : i32
    return %c0_i32, %c0_i32_0 : i32, i32
  }
  func.func @transform_4(%arg0: i32, %arg1: i32) -> (i32, i32) {
    %c0_i32 = arith.constant 0 : i32
    %c0_i32_0 = arith.constant 0 : i32
    %c0_i32_1 = arith.constant 0 : i32
    return %c0_i32, %c0_i32_0 : i32, i32
  }
  func.func @transform_5(%arg0: i32, %arg1: i32) -> (i32, i32) {
    %c0_i32 = arith.constant 0 : i32
    %c0_i32_0 = arith.constant 0 : i32
    %c0_i32_1 = arith.constant 0 : i32
    return %c0_i32, %c0_i32_0 : i32, i32
  }
  func.func @transform_6(%arg0: i32, %arg1: i32) -> (i32, i32) {
    %c0_i32 = arith.constant 0 : i32
    %c0_i32_0 = arith.constant 0 : i32
    %c0_i32_1 = arith.constant 0 : i32
    return %c0_i32, %c0_i32_0 : i32, i32
  }
  func.func @transform_7(%arg0: i32, %arg1: i32) -> (i32, i32) {
    %c0_i32 = arith.constant 0 : i32
    %c0_i32_0 = arith.constant 0 : i32
    return %arg0, %c0_i32 : i32, i32
  }
}

</mosaic_0001>

<bundles_post_ra>
// kernel: tpu_custom_call.1
= control target key start
LH: loop header
LB: loop body
LE: loop exit
PB: predicated region body
PF: predicated region fallthrough
CT: control target
= control target key end

     0   :  { %12 = vsyncpa [#allocation5], 0  ;;  %s768_s0 = inlined_call_operand.hbm [shape: f32[2,8,16], index: 0, kind: input, shape index: {}]   ;;  %s769_s1 = inlined_call_operand.hbm [shape: f32[2,8,16], index: 1, kind: input, shape index: {}]   ;;  %s770_s2 = inlined_call_operand.hbm [shape: f32[16,128], index: 2, kind: input, shape index: {}]   ;;  %s771_s3 = inlined_call_operand.hbm [shape: f32[16,128], index: 3, kind: input, shape index: {}]   ;;  %s772_s4 = inlined_call_operand.vmem [shape: f32[1,128], index: 4, kind: input, shape index: {}]   ;;  %s773_s5 = inlined_call_operand.hbm [shape: f32[128,128], index: 5, kind: input, shape index: {}]   ;;  %s774_s6 = inlined_call_operand.vmem [shape: f32[1,128], index: 6, kind: input, shape index: {}]   ;;  %s775_s7 = inlined_call_operand.hbm [shape: f32[2,128], index: 7, kind: output, shape index: {}]  }
   0x1   :  { %13 = vsyncpa [#allocation8], 0 }
   0x2   :  { %14 = vsyncpa [#allocation11], 0 }
   0x3   :  { %15 = vsyncpa [#allocation6], 0  ;;  %s641_s24 = smov [#allocation7]   ;;  %s642_s26 = smov [#allocation10]  }
   0x4   :  { %s33_s25 = sshll.u32 %s641_s24, 4  ;;  %s57_s27 = sshll.u32 %s642_s26, 4  ;;  %s34_s25 = int_to_ptr.vmem [resolvable:$true] %s33_s25  ;;  %s58_s27 = int_to_ptr.vmem [resolvable:$true] %s57_s27 }
   0x5   :  { %s521_s28 = scalar_lea.vmem %s34_s25, 256  ;;  %p526_p1 = scmp.lt.s32.totalorder %s34_s25, %s34_s25 }
   0x6   :  { %p522_p0 = scmp.ne.s32.totalorder %s34_s25, %s521_s28  ;;  %p527_p2 = scmp.lt.s32.totalorder %s521_s28, %s521_s28 }
   0x8   :  { %p528_p3 = por %p527_p2, %p526_p1 }
   0xa   :  { %p529_p4 = pnand %p528_p3, %p522_p0 }
   0xc   :  { %532 = shalt.err (!%p529_p4)
}
   0xd   :  { %s643_s29 = smov 128   ;;  %s644_s30 = smov 8  }
   0xe   :  { %39 = dma.hbm_to_vmem [thread:$0]  %s769_s1, 256, %s34_s25, [#allocation8], %s643_s29, %s643_s29, %s644_s30  }
   0xf   :  { %s541_s10 = scalar_lea.vmem %s58_s27, 256  ;;  %p546_p6 = scmp.lt.s32.totalorder %s58_s27, %s58_s27 }
  0x10   :  { %p542_p5 = scmp.ne.s32.totalorder %s58_s27, %s541_s10  ;;  %p547_p7 = scmp.lt.s32.totalorder %s541_s10, %s541_s10 }
  0x12   :  { %p548_p8 = por %p547_p7, %p546_p6 }
  0x14   :  { %p549_p9 = pnand %p548_p8, %p542_p5 }
  0x16   :  { %552 = shalt.err (!%p549_p9)
}
  0x17   :  { %63 = dma.hbm_to_vmem [thread:$0]  %s771_s3, 256, %s58_s27, [#allocation11], %s643_s29, %s643_s29, %s644_s30  }
  0x18   :  { %s645_s13 = smov [#allocation4]   ;;  %s646_s15 = smov [#allocation9]  }
  0x19   :  { %s21_s14 = sshll.u32 %s645_s13, 4  ;;  %s45_s16 = sshll.u32 %s646_s15, 4  ;;  %s22_s14 = int_to_ptr.vmem [resolvable:$true] %s21_s14  ;;  %s46_s16 = int_to_ptr.vmem [resolvable:$true] %s45_s16 }
  0x1a   :  { %s561_s1 = scalar_lea.vmem %s22_s14, 256  ;;  %p566_p11 = scmp.lt.s32.totalorder %s22_s14, %s22_s14 }
  0x1b   :  { %p562_p10 = scmp.ne.s32.totalorder %s22_s14, %s561_s1  ;;  %p567_p12 = scmp.lt.s32.totalorder %s561_s1, %s561_s1 }
  0x1d   :  { %p568_p13 = por %p567_p12, %p566_p11 }
  0x1f   :  { %p569_p0 = pnand %p568_p13, %p562_p10 }
  0x21   :  { %572 = shalt.err (!%p569_p0)
}
  0x22   :  { %27 = dma.hbm_to_vmem [thread:$0]  %s768_s0, 256, %s22_s14, [#allocation5], %s643_s29, %s643_s29, %s644_s30  }
  0x23   :  { %s581_s3 = scalar_lea.vmem %s46_s16, 256  ;;  %p586_p2 = scmp.lt.s32.totalorder %s46_s16, %s46_s16 }
  0x24   :  { %p582_p1 = scmp.ne.s32.totalorder %s46_s16, %s581_s3  ;;  %p587_p3 = scmp.lt.s32.totalorder %s581_s3, %s581_s3 }
  0x26   :  { %p588_p4 = por %p587_p3, %p586_p2 }
  0x28   :  { %p589_p5 = pnand %p588_p4, %p582_p1 }
  0x2a   :  { %592 = shalt.err (!%p589_p5)
}
  0x2b   :  { %51 = dma.hbm_to_vmem [thread:$0]  %s770_s2, 256, %s46_s16, [#allocation8], %s643_s29, %s643_s29, %s644_s30  }
  0x2c   :  { %s647_s21 = smov [#allocation12]  }
  0x2d   :  { %s71_s22 = sshll.u32 %s647_s21, 4  ;;  %s72_s22 = int_to_ptr.vmem [resolvable:$true] %s71_s22 }
  0x2e   :  { %s601_s23 = scalar_lea.vmem %s72_s22, 2048  ;;  %p606_p7 = scmp.lt.s32.totalorder %s72_s22, %s72_s22 }
  0x2f   :  { %p602_p6 = scmp.ne.s32.totalorder %s72_s22, %s601_s23  ;;  %p607_p8 = scmp.lt.s32.totalorder %s601_s23, %s601_s23 }
  0x31   :  { %p608_p9 = por %p607_p8, %p606_p7 }
  0x33   :  { %p609_p10 = pnand %p608_p9, %p602_p6 }
  0x35   :  { %612 = shalt.err (!%p609_p10)
}
  0x36   :  { %77 = dma.hbm_to_vmem [thread:$0]  %s773_s5, 2048, %s72_s22, [#allocation11], %s643_s29, %s643_s29, %s644_s30  }
  0x37   :  { %633 = dma.done.wait [#allocation5], 256  }
  0x38   :  { %634 = vsyncadd [#allocation5], 4294967040 }
  0x39   :  { %635 = dma.done.wait [#allocation8], 512  }
  0x3a   :  { %636 = vsyncadd [#allocation8], 4294966784 }
  0x3b   :  { %637 = dma.done.wait [#allocation11], 2304  }
  0x3c   :  { %638 = vsyncadd [#allocation11], 4294964992  ;;  %vm99_vm0 = vcmask 123904   ;;  %v648_v0 = vmov 0.0   ;;  %vm649_vm1 = vmmov 0   ;;  %v159_v1 = vld [vmem:[#allocation10 + $0x8] sm:$0xff] }
  0x3d   :  { %454 = vmatprep.subr.mxu1 %v648_v0  ;;  %458 = vmatprep.mubr.msk.f32.mxu1 %vm649_vm1, %v648_v0  ;;  %100 = vst.msk [vmem:[#allocation2] sm:$0x3] %vm99_vm0, %v648_v0  ;;  %101 = vst.msk [vmem:[#allocation3] sm:$0x3] %vm99_vm0, %v648_v0  ;;  %v158_v2 = vld [vmem:[#allocation10] sm:$0xff]  ;;  %v102_v3 = vld [vmem:[#allocation4] sm:$0xff] }
  0x3e   :  { %468 = vmatprep.subr.mxu0 %v648_v0  ;;  %500 = vmatprep.mubr.msk.f32.mxu0 %vm649_vm1, %v648_v0  ;;  %vm107_vm2 = vcmask 130048   ;;  %v103_v4 = vld [vmem:[#allocation4 + $0x8] sm:$0xff]  ;;  %v104_v5 = vld [vmem:[#allocation7] sm:$0xff]  ;;  %v105_v6 = vld [vmem:[#allocation7 + $0x8] sm:$0xff]  ;;  %vm124_vm3 = vcmask 1041409   ;;  %s650_s27 = smov [#allocation13]  }
  0x3f   :  { %455 = vmatpush3.msra.mxu1 %v159_v1  ;;  %v108_v7 = vsel %vm107_vm2, %v102_v3, 0.0  ;;  %v115_v9 = vsel %vm107_vm2, %v103_v4, 0.0  ;;  %v131_v11 = vsel %vm107_vm2, %v104_v5, 0.0  ;;  %v138_v12 = vsel %vm107_vm2, %v105_v6, 0.0  ;;  %v330_v13 = vld [vmem:[#allocation12 + $0x78] sm:$0xff]  ;;  %v329_v17 = vld [vmem:[#allocation12 + $0x70] sm:$0xff] }
  0x40   :  { %456 = vmatprep.subr.mxu1 %v648_v0  ;;  %v109_v8 = vrot.slane %v108_v7, 4  ;;  %v116_v10 = vrot.slane %v115_v9, 4  ;;  %v132_v15 = vrot.slane %v131_v11, 4  ;;  %v139_v16 = vrot.slane %v138_v12, 4  ;;  %469 = vmatpush3.msra.mxu0 %v330_v13  ;;  %v328_v19 = vld [vmem:[#allocation12 + $0x68] sm:$0xff]  ;;  %v327_v24 = vld [vmem:[#allocation12 + $0x60] sm:$0xff] }
  0x41   :  { %457 = vmatpush3.msra.mxu1 %v158_v2  ;;  %470 = vmatprep.subr.mxu0 %v648_v0  ;;  %v326_v29 = vld [vmem:[#allocation12 + $0x58] sm:$0xff]  ;;  %v325_v34 = vld [vmem:[#allocation12 + $0x50] sm:$0xff]  ;;  %v324_v40 = vld [vmem:[#allocation12 + $0x48] sm:$0xff]  ;;  %s416_s28 = sshll.u32 %s650_s27, 4  ;;  %s417_s28 = int_to_ptr.vmem [resolvable:$true] %s416_s28 }
  0x42   :  { %461 = vmatprep.subr.mxu1 %v648_v0  ;;  %v110_v14 = vadd.f32 %v109_v8, %v108_v7  ;;  %v117_v18 = vadd.f32 %v116_v10, %v115_v9  ;;  %v133_v21 = vadd.f32 %v132_v15, %v131_v11  ;;  %v140_v22 = vadd.f32 %v139_v16, %v138_v12  ;;  %v323_v45 = vld [vmem:[#allocation12 + $0x40] sm:$0xff]  ;;  %v322_v49 = vld [vmem:[#allocation12 + $0x38] sm:$0xff]  ;;  %v321_v50 = vld [vmem:[#allocation12 + $0x30] sm:$0xff]  ;;  %s613_s29 = scalar_lea.vmem %s417_s28, 32  ;;  %p618_p12 = scmp.lt.s32.totalorder %s417_s28, %s417_s28 }
  0x43   :  { %471 = vmatpush3.msra.mxu0 %v329_v17  ;;  %v157_v51 = vld [vmem:[#allocation9 + $0x8] sm:$0xff]  ;;  %v156_v53 = vld [vmem:[#allocation9] sm:$0xff]  ;;  %v318_v57 = vld [vmem:[#allocation12 + $0x18] sm:$0xff]  ;;  %p614_p11 = scmp.ne.s32.totalorder %s417_s28, %s613_s29  ;;  %p619_p13 = scmp.lt.s32.totalorder %s613_s29, %s613_s29 }
  0x44   :  { %v111_v20 = vrot.slane %v110_v14, 2  ;;  %v118_v23 = vrot.slane %v117_v18, 2  ;;  %472 = vmatprep.subr.mxu0 %v648_v0  ;;  %v134_v26 = vrot.slane %v133_v21, 2  ;;  %v141_v27 = vrot.slane %v140_v22, 2  ;;  %v106_v38 = vld [vmem:[#allocation2] sm:$0x3] }
  0x45   :  { %473 = vmatpush3.msra.mxu0 %v328_v19  ;;  %v130_v41 = vld [vmem:[#allocation3] sm:$0x3]  ;;  %v320_v55 = vld [vmem:[#allocation12 + $0x28] sm:$0xff]  ;;  %v319_v56 = vld [vmem:[#allocation12 + $0x20] sm:$0xff]  ;;  %p620_p0 = por %p619_p13, %p618_p12 }
  0x46   :  { %v112_v25 = vadd.f32 %v111_v20, %v110_v14  ;;  %v119_v28 = vadd.f32 %v118_v23, %v117_v18  ;;  %474 = vmatprep.subr.mxu0 %v648_v0  ;;  %v135_v31 = vadd.f32 %v134_v26, %v133_v21  ;;  %v142_v32 = vadd.f32 %v141_v27, %v140_v22  ;;  %v317_v58 = vld [vmem:[#allocation12 + $0x10] sm:$0xff]  ;;  %v316_v59 = vld [vmem:[#allocation12 + $0x8] sm:$0xff]  ;;  %v315_v60 = vld [vmem:[#allocation12] sm:$0xff] }
  0x47   :  { %475 = vmatpush3.msra.mxu0 %v327_v24  ;;  %v429_v1 = vld [vmem:[%s772_s4] ss:$0 sm:$0xff]  ;;  %p621_p1 = pnand %p620_p0, %p614_p11 }
  0x48   :  { %v113_v30 = vrot.slane %v112_v25, 1  ;;  %v120_v33 = vrot.slane %v119_v28, 1  ;;  %476 = vmatprep.subr.mxu0 %v648_v0  ;;  %v136_v36 = vrot.slane %v135_v31, 1  ;;  %v143_v37 = vrot.slane %v142_v32, 1  ;;  %v430_v6 = vld [vmem:[%s774_s6] ss:$0 sm:$0xff] }
  0x49   :  { %477 = vmatpush3.msra.mxu0 %v326_v29 }
  0x4a   :  { %v114_v35 = vadd.f32 %v113_v30, %v112_v25  ;;  %v121_v39 = vadd.f32 %v120_v33, %v119_v28  ;;  %478 = vmatprep.subr.mxu0 %v648_v0  ;;  %v137_v42 = vadd.f32 %v136_v36, %v135_v31  ;;  %v144_v43 = vadd.f32 %v143_v37, %v142_v32 }
  0x4b   :  { %479 = vmatpush3.msra.mxu0 %v325_v34 }
  0x4c   :  { %v125_v44 = vsel %vm124_vm3, %v121_v39, %v114_v35  ;;  %480 = vmatprep.subr.mxu0 %v648_v0  ;;  %v147_v47 = vsel %vm124_vm3, %v144_v43, %v137_v42 }
  0x4d   :  { %v127_v46 = vadd.f32 %v125_v44, %v106_v38  ;;  %481 = vmatpush3.msra.mxu0 %v324_v40  ;;  %v149_v48 = vadd.f32 %v147_v47, %v130_v41 }
  0x4e   :  { %482 = vmatprep.subr.mxu0 %v648_v0 }
  0x4f   :  { %129 = vst.msk [vmem:[#allocation2] sm:$0x3] %vm99_vm0, %v127_v46  ;;  %483 = vmatpush3.msra.mxu0 %v323_v45  ;;  %150 = vst.msk [vmem:[#allocation3] sm:$0x3] %vm99_vm0, %v149_v48 }
  0x50   :  { %484 = vmatprep.subr.mxu0 %v648_v0 }
  0x51   :  { %485 = vmatpush3.msra.mxu0 %v322_v49 }
  0x52   :  { %486 = vmatprep.subr.mxu0 %v648_v0 }
  0x53   :  { %487 = vmatpush3.msra.mxu0 %v321_v50 }
  0x54   :  { %488 = vmatprep.subr.mxu0 %v648_v0 }
  0x55   :  { %489 = vmatpush3.msra.mxu0 %v320_v55 }
  0x56   :  { %v155_v52 = vld [vmem:[#allocation3] sm:$0x3]  ;;  %v154_v54 = vld [vmem:[#allocation2] sm:$0x3]  ;;  %490 = vmatprep.subr.mxu0 %v648_v0 }
  0x57   :  { %459 = vmatmul.mubr.msk.f32.vlgmr.msra.gmra.mxu1 %vm107_vm2, %v155_v52  ;;  %491 = vmatpush3.msra.mxu0 %v319_v56 }
  0x58   :  { %462 = vmatpush3.msra.mxu1 %v157_v51  ;;  %465 = vmatprep.mubr.msk.f32.mxu1 %vm649_vm1, %v648_v0 }
  0x59   :  { %463 = vmatprep.subr.mxu1 %v648_v0  ;;  %492 = vmatprep.subr.mxu0 %v648_v0 }
  0x5a   :  { %464 = vmatpush3.msra.mxu1 %v156_v53  ;;  %493 = vmatpush3.msra.mxu0 %v318_v57 }
  0x5b   :  { %466 = vmatmul.mubr.msk.f32.vlgmr.msra.gmra.mxu1 %vm107_vm2, %v154_v54  ;;  %494 = vmatprep.subr.mxu0 %v648_v0 }
  0x5c   :  { %495 = vmatpush3.msra.mxu0 %v317_v58 }
  0x5d   :  { %496 = vmatprep.subr.mxu0 %v648_v0 }
  0x5e   :  { %497 = vmatpush3.msra.mxu0 %v316_v59 }
  0x5f   :  { %498 = vmatprep.subr.mxu0 %v648_v0 }
  0x60   :  { %499 = vmatpush3.msra.mxu0 %v315_v60 }
 0x117   :  { %v229_v61 = vpop.f32.mrf.mxu1 }
 0x119   :  { %v460_v62 = vpop.f32.mrf.mxu1 }
 0x11b   :  { %v302_v63 = vpop.f32.mrf.mxu1 }
 0x11c   :  { %v303_v2 = vadd.f32 %v302_v63, %v229_v61 }
 0x11d   :  { %v467_v3 = vpop.f32.mrf.mxu1 }
 0x11e   :  { %v313_v4 = vadd.f32 %v429_v1, %v303_v2 }
 0x120   :  { %v314_v5 = vmax.f32 %v313_v4, 0.0 }
 0x122   :  { %501 = vmatmul.mubr.f32.vlgmr.msra.gmra.mxu0 %v314_v5 }
 0x1e2   :  { %v404_v7 = vpop.f32.mrf.mxu0 }
 0x1e3   :  { %v405_v0 = vadd.f32 %v430_v6, %v404_v7 }
 0x1e4   :  { %v502_v8 = vpop.f32.mrf.mxu0 }
 0x1e5   :  { %v408_v9 = vmax.f32 %v405_v0, 0.0 }
 0x1e7   :  { %409 = vst [vmem:[#allocation13] sm:$0x3] %v408_v9 }
 0x1e8   :  { %624 = shalt.err (!%p621_p1)
}
 0x1e9   :  { %419 = dma.vmem_to_hbm [thread:$0]  %s417_s28, 32, %s775_s7, [#allocation6]  }
 0x1ea   :  { %639 = dma.done.wait [#allocation6], 32  }
 0x1eb   :  { %640 = vsyncadd [#allocation6], 4294967264 }
 0x1ec   :  { %423 = vsyncpa [#allocation5], 1 }
 0x1ed   :  { %424 = vsyncpa [#allocation8], 1 }
 0x1ee   :  { %425 = vsyncpa [#allocation11], 1 }
 0x1ef   :  { %426 = vsyncpa [#allocation6], 1 }

</bundles_post_ra>
